<compile_context>
chip_gen: v7x
topology: tpu7x:2x2x1
jax: 0.10.0
libtpu: 0.0.40
codegen_flags: <defaults>
</compile_context>

<pallas_src>
import functools

import jax
import jax.numpy as jnp
from jax.experimental import pallas as pl
from jax.experimental.pallas import tpu as pltpu

LANE = 128


def _round_up(x, m):
    return ((x + m - 1) // m) * m


def reflexnet_kernel(x_ref,
                     w1_ref, b1_ref,
                     w2_ref, b2_ref,
                     w3_ref, b3_ref,
                     w4_ref, b4_ref,
                     w5_ref, b5_ref,
                     o_ref,
                     *, scalar):
    """Fused forward: 5 bf16 MXU matmuls (f32 accumulation) + f32 activations."""
    # Cast to bf16 in-kernel (VPU work hidden under the first matmul) instead of
    # materializing a padded bf16 copy of x in the wrapper.
    h = x_ref[...].astype(jnp.bfloat16)               # (TILE_B, n_state)

    # Linear(n_state, h) + ReLU
    h = jnp.dot(h, w1_ref[...], preferred_element_type=jnp.float32) + b1_ref[...]
    h = jnp.maximum(h, 0.0).astype(jnp.bfloat16)

    # Linear(h, h) + ReLU
    h = jnp.dot(h, w2_ref[...], preferred_element_type=jnp.float32) + b2_ref[...]
    h = jnp.maximum(h, 0.0).astype(jnp.bfloat16)

    # Linear(h, 2h) + ReLU
    h = jnp.dot(h, w3_ref[...], preferred_element_type=jnp.float32) + b3_ref[...]
    h = jnp.maximum(h, 0.0).astype(jnp.bfloat16)

    # Linear(2h, 4h) + ReLU
    h = jnp.dot(h, w4_ref[...], preferred_element_type=jnp.float32) + b4_ref[...]
    h = jnp.maximum(h, 0.0).astype(jnp.bfloat16)

    # Linear(4h, T*n_ctrl) + Tanh, then * scalar (scalar is a compile-time
    # constant; changing it recompiles — acceptable for this module).
    y = jnp.dot(h, w5_ref[...], preferred_element_type=jnp.float32) + b5_ref[...]
    o_ref[...] = (jnp.tanh(y) * scalar).astype(o_ref.dtype)


def prepare_params(params):
    """One-time preprocessing of nn.Linear params for the kernel.

    Pads every output (lane) dim to a multiple of 128, chains the padded input
    dims (layer-1 keeps the TRUE n_state because x is passed unpadded), and
    casts weights to bf16 / biases to f32.  Call once at init, not per forward.
    """
    flat, dims = [], []
    d_in_pad = params[0][0].shape[0]          # layer-1 contraction dim unpadded
    for (w, b) in params:
        d_in, d_out = w.shape
        assert d_in <= d_in_pad, "layer dims must chain"
        d_out_pad = _round_up(d_out, LANE)
        w_p = jnp.zeros((d_in_pad, d_out_pad), jnp.bfloat16)
        w_p = w_p.at[:d_in, :d_out].set(w.astype(jnp.bfloat16))
        b_p = jnp.zeros((1, d_out_pad), jnp.float32)
        b_p = b_p.at[:, :d_out].set(b.astype(jnp.float32))
        flat.extend([w_p, b_p])
        dims.append((d_in_pad, d_out_pad))
        d_in_pad = d_out_pad
    out_dim = params[-1][0].shape[1]
    return tuple(flat), tuple(dims), out_dim


def _default_tile_b(B, weight_bytes, bytes_per_row):
    """Pick a batch tile from the VMEM budget (conservative across chips)."""
    # 3/4 of v7x's 64 MiB per TensorCore (smallest VMEM of v5e/v6e/v7x).
    budget = (48 << 20) - 2 * weight_bytes
    cap = max(budget // max(bytes_per_row, 1), 16)
    if B <= 32:
        # bf16 packs 16 rows per vreg -> round small batches to 16, not 8.
        return int(min(_round_up(B, 16), _round_up(cap, 16)))
    # Large B: big M tiles (amortize ~0.35us/step, feed the 256x256 MXU) but
    # keep >= 2 grid steps so both v7x TensorCores get work.
    t = int(min(_round_up(pl.cdiv(B, 2), 16), 1024, cap))
    if t >= 128:
        t = (t // 128) * 128          # 128-aligned M tiles (v5e MXU friendly)
    else:
        t = max(16, (t // 16) * 16)
    return t


def reflexnet_forward(x, prepared, scalar=2.0, tile_b=None):
    """x: (B, n_state) float32.  prepared: output of prepare_params()."""
    flat, dims, out_dim = prepared
    B, n_state = x.shape
    assert dims[0][0] == n_state, "x feature dim must match layer-1 fan_in"
    out_pad = dims[-1][1]
    widest = max(do for _, do in dims)

    weight_bytes = sum(int(a.size) * a.dtype.itemsize for a in flat)
    # Per-batch-row VMEM estimate: double-buffered f32 x tile, double-buffered
    # bf16 out tile, widest f32 intermediate + its bf16 copy, plus slack for
    # the other live bf16 intermediates.
    bytes_per_row = (2 * n_state * 4
                     + 2 * out_pad * 2
                     + widest * (4 + 2)
                     + sum(do for _, do in dims) * 2)

    if tile_b is None:
        tile_b = _default_tile_b(B, weight_bytes, bytes_per_row)

    # Batch-only padding (no dtype cast, no lane padding); skipped entirely
    # when B is already a tile multiple.
    B_pad = _round_up(B, tile_b)
    x_in = x if B_pad == B else jnp.pad(x, ((0, B_pad - B), (0, 0)))
    grid = (B_pad // tile_b,)

    flops = 2 * B_pad * sum(di * do for di, do in dims)
    bytes_accessed = int(x_in.size * 4 + weight_bytes + B_pad * out_pad * 2)
    cost = pl.CostEstimate(flops=flops,
                           transcendentals=B_pad * out_pad,
                           bytes_accessed=bytes_accessed)

    def build(single_buffer_weights):
        # x / out walk the batch grid; weights/biases stay resident (constant
        # block index).  Single-buffer the resident operands: the second
        # pipeline buffer would be pure VMEM waste.
        in_specs = [pl.BlockSpec((tile_b, n_state), lambda i: (i, 0))]
        for (d_in_p, d_out_p) in dims:
            if single_buffer_weights:
                pm = pl.Buffered(buffer_count=1)
                in_specs.append(pl.BlockSpec((d_in_p, d_out_p), lambda i: (0, 0),
                                             pipeline_mode=pm))
                in_specs.append(pl.BlockSpec((1, d_out_p), lambda i: (0, 0),
                                             pipeline_mode=pm))
            else:
                in_specs.append(pl.BlockSpec((d_in_p, d_out_p), lambda i: (0, 0)))
                in_specs.append(pl.BlockSpec((1, d_out_p), lambda i: (0, 0)))
        out_spec = pl.BlockSpec((tile_b, out_pad), lambda i: (i, 0))

        vmem_need = (weight_bytes * (1 if single_buffer_weights else 2)
                     + tile_b * bytes_per_row)
        vmem_limit = int(min(64 << 20, max(2 * vmem_need, 16 << 20)))

        return pl.pallas_call(
            functools.partial(reflexnet_kernel, scalar=scalar),
            out_shape=jax.ShapeDtypeStruct((B_pad, out_pad), jnp.bfloat16),
            grid=grid,
            in_specs=in_specs,
            out_specs=out_spec,
            compiler_params=pltpu.CompilerParams(
                dimension_semantics=("parallel",),
                vmem_limit_bytes=vmem_limit,
            ),
            cost_estimate=cost,
        )

    try:
        out_p = build(True)(x_in, *flat)
    except Exception:
        # Robustness fallback: if this jax build rejects Buffered(1) on the
        # main pallas_call pipeline, rerun with default double buffering
        # (correct, just slightly more weight VMEM).
        out_p = build(False)(x_in, *flat)

    # Slice off padded batch rows / lanes; upcast the bf16 output for callers.
    return out_p[:B, :out_dim].astype(jnp.float32)


def init_params(key, n_state, n_ctrl, h_dim, T):
    """PyTorch-nn.Linear-like init: U(-1/sqrt(fan_in), 1/sqrt(fan_in))."""
    dims = [
        (n_state, h_dim),
        (h_dim, h_dim),
        (h_dim, 2 * h_dim),
        (2 * h_dim, 4 * h_dim),
        (4 * h_dim, T * n_ctrl),
    ]
    params = []
    for (fan_in, fan_out) in dims:
        key, kw, kb = jax.random.split(key, 3)
        bound = 1.0 / jnp.sqrt(float(fan_in))
        w = jax.random.uniform(kw, (fan_in, fan_out), jnp.float32, -bound, bound)
        b = jax.random.uniform(kb, (1, fan_out), jnp.float32, -bound, bound)
        params.append((w, b))
    return params


def reflexnet_reference(x, params, scalar=2.0):
    """Pure-JAX f32 reference."""
    h = x
    for i, (w, b) in enumerate(params):
        h = h @ w + b
        if i < len(params) - 1:
            h = jnp.maximum(h, 0.0)
        else:
            h = jnp.tanh(h)
    return h * scalar


if __name__ == "__main__":
    # Small shapes consistent with the module: xinits is (batch, n_state).
    batch, n_state, n_ctrl, h_dim, T = 8, 4, 2, 32, 8

    key = jax.random.PRNGKey(0)
    key, kx = jax.random.split(key)
    x = jax.random.normal(kx, (batch, n_state), dtype=jnp.float32)

    params = init_params(key, n_state, n_ctrl, h_dim, T)
    prepared = prepare_params(params)   # one-time pad + bf16 cast (not per call)

    out = reflexnet_forward(x, prepared, scalar=2.0)
    out = jax.block_until_ready(out)

    ref = reflexnet_reference(x, params, scalar=2.0)
    assert out.shape == (batch, T * n_ctrl), out.shape
    # Tolerance accounts for bf16 matmul operands + bf16 output writeback
    # (expected quantization error, not a bug).
    assert jnp.allclose(out, ref, atol=5e-2, rtol=5e-2), \
        float(jnp.max(jnp.abs(out - ref)))

    print("KERNEL_OK")
</pallas_src>

<mosaic_0001>
module attributes {stable_mosaic.version = 11 : i64} {
  func.func @reflexnet_kernel(%arg0: i32, %arg1: memref<16x4xf32, #tpu.memory_space<vmem>>, %arg2: memref<4x128xbf16, #tpu.memory_space<vmem>>, %arg3: memref<1x128xf32, #tpu.memory_space<vmem>>, %arg4: memref<128x128xbf16, #tpu.memory_space<vmem>>, %arg5: memref<1x128xf32, #tpu.memory_space<vmem>>, %arg6: memref<128x128xbf16, #tpu.memory_space<vmem>>, %arg7: memref<1x128xf32, #tpu.memory_space<vmem>>, %arg8: memref<128x128xbf16, #tpu.memory_space<vmem>>, %arg9: memref<1x128xf32, #tpu.memory_space<vmem>>, %arg10: memref<128x128xbf16, #tpu.memory_space<vmem>>, %arg11: memref<1x128xf32, #tpu.memory_space<vmem>>, %arg12: memref<16x128xbf16, #tpu.memory_space<vmem>>) attributes {dimension_semantics = [#tpu.dimension_semantics<parallel>], iteration_bounds = array<i64: 1>, scalar_prefetch = 0 : i64, scratch_operands = 0 : i64, tpu.core_type = #tpu.core_type<tc>, window_params = [{transform_indices = @transform_0, window_bounds = array<i64: 16, 4>}, {pipeline_mode = #tpu.pipeline_mode<synchronous>, transform_indices = @transform_1, window_bounds = array<i64: 4, 128>}, {pipeline_mode = #tpu.pipeline_mode<synchronous>, transform_indices = @transform_2, window_bounds = array<i64: 1, 128>}, {pipeline_mode = #tpu.pipeline_mode<synchronous>, transform_indices = @transform_3, window_bounds = array<i64: 128, 128>}, {pipeline_mode = #tpu.pipeline_mode<synchronous>, transform_indices = @transform_4, window_bounds = array<i64: 1, 128>}, {pipeline_mode = #tpu.pipeline_mode<synchronous>, transform_indices = @transform_5, window_bounds = array<i64: 128, 128>}, {pipeline_mode = #tpu.pipeline_mode<synchronous>, transform_indices = @transform_6, window_bounds = array<i64: 1, 128>}, {pipeline_mode = #tpu.pipeline_mode<synchronous>, transform_indices = @transform_7, window_bounds = array<i64: 128, 128>}, {pipeline_mode = #tpu.pipeline_mode<synchronous>, transform_indices = @transform_8, window_bounds = array<i64: 1, 128>}, {pipeline_mode = #tpu.pipeline_mode<synchronous>, transform_indices = @transform_9, window_bounds = array<i64: 128, 128>}, {pipeline_mode = #tpu.pipeline_mode<synchronous>, transform_indices = @transform_10, window_bounds = array<i64: 1, 128>}, {transform_indices = @transform_11, window_bounds = array<i64: 16, 128>}]} {
    %c0 = arith.constant 0 : index
    %c0_0 = arith.constant 0 : index
    %0 = vector.load %arg1[%c0, %c0_0] : memref<16x4xf32, #tpu.memory_space<vmem>>, vector<16x4xf32>
    %1 = arith.truncf %0 : vector<16x4xf32> to vector<16x4xbf16>
    %c0_1 = arith.constant 0 : index
    %c0_2 = arith.constant 0 : index
    %2 = vector.load %arg2[%c0_1, %c0_2] : memref<4x128xbf16, #tpu.memory_space<vmem>>, vector<4x128xbf16>
    %cst = arith.constant dense<0.000000e+00> : vector<16x128xf32>
    %3 = tpu.matmul %1, %2, %cst {dimension_numbers = #tpu.dot_dimension_numbers<[1], [0], [0], [1], [0, 0, 1, 1], [], []>} : vector<16x4xbf16>, vector<4x128xbf16>, vector<16x128xf32> -> vector<16x128xf32>
    %c0_3 = arith.constant 0 : index
    %c0_4 = arith.constant 0 : index
    %4 = vector.load %arg3[%c0_3, %c0_4] : memref<1x128xf32, #tpu.memory_space<vmem>>, vector<1x128xf32>
    %5 = vector.broadcast %4 : vector<1x128xf32> to vector<16x128xf32>
    %6 = arith.addf %3, %5 : vector<16x128xf32>
    %cst_5 = arith.constant 0.000000e+00 : f32
    %7 = vector.broadcast %cst_5 : f32 to vector<16x128xf32>
    %8 = arith.maximumf %6, %7 : vector<16x128xf32>
    %9 = arith.truncf %8 : vector<16x128xf32> to vector<16x128xbf16>
    %c0_6 = arith.constant 0 : index
    %c0_7 = arith.constant 0 : index
    %10 = vector.load %arg4[%c0_6, %c0_7] : memref<128x128xbf16, #tpu.memory_space<vmem>>, vector<128x128xbf16>
    %cst_8 = arith.constant dense<0.000000e+00> : vector<16x128xf32>
    %11 = tpu.matmul %9, %10, %cst_8 {dimension_numbers = #tpu.dot_dimension_numbers<[1], [0], [0], [1], [0, 0, 1, 1], [], []>} : vector<16x128xbf16>, vector<128x128xbf16>, vector<16x128xf32> -> vector<16x128xf32>
    %c0_9 = arith.constant 0 : index
    %c0_10 = arith.constant 0 : index
    %12 = vector.load %arg5[%c0_9, %c0_10] : memref<1x128xf32, #tpu.memory_space<vmem>>, vector<1x128xf32>
    %13 = vector.broadcast %12 : vector<1x128xf32> to vector<16x128xf32>
    %14 = arith.addf %11, %13 : vector<16x128xf32>
    %cst_11 = arith.constant 0.000000e+00 : f32
    %15 = vector.broadcast %cst_11 : f32 to vector<16x128xf32>
    %16 = arith.maximumf %14, %15 : vector<16x128xf32>
    %17 = arith.truncf %16 : vector<16x128xf32> to vector<16x128xbf16>
    %c0_12 = arith.constant 0 : index
    %c0_13 = arith.constant 0 : index
    %18 = vector.load %arg6[%c0_12, %c0_13] : memref<128x128xbf16, #tpu.memory_space<vmem>>, vector<128x128xbf16>
    %cst_14 = arith.constant dense<0.000000e+00> : vector<16x128xf32>
    %19 = tpu.matmul %17, %18, %cst_14 {dimension_numbers = #tpu.dot_dimension_numbers<[1], [0], [0], [1], [0, 0, 1, 1], [], []>} : vector<16x128xbf16>, vector<128x128xbf16>, vector<16x128xf32> -> vector<16x128xf32>
    %c0_15 = arith.constant 0 : index
    %c0_16 = arith.constant 0 : index
    %20 = vector.load %arg7[%c0_15, %c0_16] : memref<1x128xf32, #tpu.memory_space<vmem>>, vector<1x128xf32>
    %21 = vector.broadcast %20 : vector<1x128xf32> to vector<16x128xf32>
    %22 = arith.addf %19, %21 : vector<16x128xf32>
    %cst_17 = arith.constant 0.000000e+00 : f32
    %23 = vector.broadcast %cst_17 : f32 to vector<16x128xf32>
    %24 = arith.maximumf %22, %23 : vector<16x128xf32>
    %25 = arith.truncf %24 : vector<16x128xf32> to vector<16x128xbf16>
    %c0_18 = arith.constant 0 : index
    %c0_19 = arith.constant 0 : index
    %26 = vector.load %arg8[%c0_18, %c0_19] : memref<128x128xbf16, #tpu.memory_space<vmem>>, vector<128x128xbf16>
    %cst_20 = arith.constant dense<0.000000e+00> : vector<16x128xf32>
    %27 = tpu.matmul %25, %26, %cst_20 {dimension_numbers = #tpu.dot_dimension_numbers<[1], [0], [0], [1], [0, 0, 1, 1], [], []>} : vector<16x128xbf16>, vector<128x128xbf16>, vector<16x128xf32> -> vector<16x128xf32>
    %c0_21 = arith.constant 0 : index
    %c0_22 = arith.constant 0 : index
    %28 = vector.load %arg9[%c0_21, %c0_22] : memref<1x128xf32, #tpu.memory_space<vmem>>, vector<1x128xf32>
    %29 = vector.broadcast %28 : vector<1x128xf32> to vector<16x128xf32>
    %30 = arith.addf %27, %29 : vector<16x128xf32>
    %cst_23 = arith.constant 0.000000e+00 : f32
    %31 = vector.broadcast %cst_23 : f32 to vector<16x128xf32>
    %32 = arith.maximumf %30, %31 : vector<16x128xf32>
    %33 = arith.truncf %32 : vector<16x128xf32> to vector<16x128xbf16>
    %c0_24 = arith.constant 0 : index
    %c0_25 = arith.constant 0 : index
    %34 = vector.load %arg10[%c0_24, %c0_25] : memref<128x128xbf16, #tpu.memory_space<vmem>>, vector<128x128xbf16>
    %cst_26 = arith.constant dense<0.000000e+00> : vector<16x128xf32>
    %35 = tpu.matmul %33, %34, %cst_26 {dimension_numbers = #tpu.dot_dimension_numbers<[1], [0], [0], [1], [0, 0, 1, 1], [], []>} : vector<16x128xbf16>, vector<128x128xbf16>, vector<16x128xf32> -> vector<16x128xf32>
    %c0_27 = arith.constant 0 : index
    %c0_28 = arith.constant 0 : index
    %36 = vector.load %arg11[%c0_27, %c0_28] : memref<1x128xf32, #tpu.memory_space<vmem>>, vector<1x128xf32>
    %37 = vector.broadcast %36 : vector<1x128xf32> to vector<16x128xf32>
    %38 = arith.addf %35, %37 : vector<16x128xf32>
    %39 = math.tanh %38 : vector<16x128xf32>
    %cst_29 = arith.constant 2.000000e+00 : f32
    %40 = vector.broadcast %cst_29 : f32 to vector<16x128xf32>
    %41 = arith.mulf %39, %40 : vector<16x128xf32>
    %42 = arith.truncf %41 : vector<16x128xf32> to vector<16x128xbf16>
    %c0_30 = arith.constant 0 : index
    %c0_31 = arith.constant 0 : index
    %43 = vector.load %arg12[%c0_30, %c0_31] : memref<16x128xbf16, #tpu.memory_space<vmem>>, vector<16x128xbf16>
    tpu.vector_store %arg12[%c0_30, %c0_31], %42 {strides = array<i32>} : memref<16x128xbf16, #tpu.memory_space<vmem>>, vector<16x128xbf16>,
    return
  }
  func.func @transform_0(%arg0: i32) -> (i32, i32) {
    %c0_i32 = arith.constant 0 : i32
    %c0_i32_0 = arith.constant 0 : i32
    return %arg0, %c0_i32 : i32, i32
  }
  func.func @transform_1(%arg0: i32) -> (i32, i32) {
    %c0_i32 = arith.constant 0 : i32
    %c0_i32_0 = arith.constant 0 : i32
    %c0_i32_1 = arith.constant 0 : i32
    return %c0_i32, %c0_i32_0 : i32, i32
  }
  func.func @transform_2(%arg0: i32) -> (i32, i32) {
    %c0_i32 = arith.constant 0 : i32
    %c0_i32_0 = arith.constant 0 : i32
    %c0_i32_1 = arith.constant 0 : i32
    return %c0_i32, %c0_i32_0 : i32, i32
  }
  func.func @transform_3(%arg0: i32) -> (i32, i32) {
    %c0_i32 = arith.constant 0 : i32
    %c0_i32_0 = arith.constant 0 : i32
    %c0_i32_1 = arith.constant 0 : i32
    return %c0_i32, %c0_i32_0 : i32, i32
  }
  func.func @transform_4(%arg0: i32) -> (i32, i32) {
    %c0_i32 = arith.constant 0 : i32
    %c0_i32_0 = arith.constant 0 : i32
    %c0_i32_1 = arith.constant 0 : i32
    return %c0_i32, %c0_i32_0 : i32, i32
  }
  func.func @transform_5(%arg0: i32) -> (i32, i32) {
    %c0_i32 = arith.constant 0 : i32
    %c0_i32_0 = arith.constant 0 : i32
    %c0_i32_1 = arith.constant 0 : i32
    return %c0_i32, %c0_i32_0 : i32, i32
  }
  func.func @transform_6(%arg0: i32) -> (i32, i32) {
    %c0_i32 = arith.constant 0 : i32
    %c0_i32_0 = arith.constant 0 : i32
    %c0_i32_1 = arith.constant 0 : i32
    return %c0_i32, %c0_i32_0 : i32, i32
  }
  func.func @transform_7(%arg0: i32) -> (i32, i32) {
    %c0_i32 = arith.constant 0 : i32
    %c0_i32_0 = arith.constant 0 : i32
    %c0_i32_1 = arith.constant 0 : i32
    return %c0_i32, %c0_i32_0 : i32, i32
  }
  func.func @transform_8(%arg0: i32) -> (i32, i32) {
    %c0_i32 = arith.constant 0 : i32
    %c0_i32_0 = arith.constant 0 : i32
    %c0_i32_1 = arith.constant 0 : i32
    return %c0_i32, %c0_i32_0 : i32, i32
  }
  func.func @transform_9(%arg0: i32) -> (i32, i32) {
    %c0_i32 = arith.constant 0 : i32
    %c0_i32_0 = arith.constant 0 : i32
    %c0_i32_1 = arith.constant 0 : i32
    return %c0_i32, %c0_i32_0 : i32, i32
  }
  func.func @transform_10(%arg0: i32) -> (i32, i32) {
    %c0_i32 = arith.constant 0 : i32
    %c0_i32_0 = arith.constant 0 : i32
    %c0_i32_1 = arith.constant 0 : i32
    return %c0_i32, %c0_i32_0 : i32, i32
  }
  func.func @transform_11(%arg0: i32) -> (i32, i32) {
    %c0_i32 = arith.constant 0 : i32
    %c0_i32_0 = arith.constant 0 : i32
    return %arg0, %c0_i32 : i32, i32
  }
}

module attributes {stable_mosaic.version = 11 : i64} {
  func.func @reflexnet_kernel(%arg0: i32, %arg1: memref<16x4xf32, #tpu.memory_space<vmem>>, %arg2: memref<4x128xbf16, #tpu.memory_space<vmem>>, %arg3: memref<1x128xf32, #tpu.memory_space<vmem>>, %arg4: memref<128x128xbf16, #tpu.memory_space<vmem>>, %arg5: memref<1x128xf32, #tpu.memory_space<vmem>>, %arg6: memref<128x128xbf16, #tpu.memory_space<vmem>>, %arg7: memref<1x128xf32, #tpu.memory_space<vmem>>, %arg8: memref<128x128xbf16, #tpu.memory_space<vmem>>, %arg9: memref<1x128xf32, #tpu.memory_space<vmem>>, %arg10: memref<128x128xbf16, #tpu.memory_space<vmem>>, %arg11: memref<1x128xf32, #tpu.memory_space<vmem>>, %arg12: memref<16x128xbf16, #tpu.memory_space<vmem>>) attributes {dimension_semantics = [#tpu.dimension_semantics<parallel>], iteration_bounds = array<i64: 1>, scalar_prefetch = 0 : i64, scratch_operands = 0 : i64, tpu.core_type = #tpu.core_type<tc>, window_params = [{transform_indices = @transform_0, window_bounds = array<i64: 16, 4>}, {pipeline_mode = #tpu.pipeline_mode<synchronous>, transform_indices = @transform_1, window_bounds = array<i64: 4, 128>}, {pipeline_mode = #tpu.pipeline_mode<synchronous>, transform_indices = @transform_2, window_bounds = array<i64: 1, 128>}, {pipeline_mode = #tpu.pipeline_mode<synchronous>, transform_indices = @transform_3, window_bounds = array<i64: 128, 128>}, {pipeline_mode = #tpu.pipeline_mode<synchronous>, transform_indices = @transform_4, window_bounds = array<i64: 1, 128>}, {pipeline_mode = #tpu.pipeline_mode<synchronous>, transform_indices = @transform_5, window_bounds = array<i64: 128, 128>}, {pipeline_mode = #tpu.pipeline_mode<synchronous>, transform_indices = @transform_6, window_bounds = array<i64: 1, 128>}, {pipeline_mode = #tpu.pipeline_mode<synchronous>, transform_indices = @transform_7, window_bounds = array<i64: 128, 128>}, {pipeline_mode = #tpu.pipeline_mode<synchronous>, transform_indices = @transform_8, window_bounds = array<i64: 1, 128>}, {pipeline_mode = #tpu.pipeline_mode<synchronous>, transform_indices = @transform_9, window_bounds = array<i64: 128, 128>}, {pipeline_mode = #tpu.pipeline_mode<synchronous>, transform_indices = @transform_10, window_bounds = array<i64: 1, 128>}, {transform_indices = @transform_11, window_bounds = array<i64: 16, 128>}]} {
    %c0 = arith.constant 0 : index
    %c0_0 = arith.constant 0 : index
    %0 = vector.load %arg1[%c0, %c0_0] : memref<16x4xf32, #tpu.memory_space<vmem>>, vector<16x4xf32>
    %1 = arith.truncf %0 : vector<16x4xf32> to vector<16x4xbf16>
    %c0_1 = arith.constant 0 : index
    %c0_2 = arith.constant 0 : index
    %2 = vector.load %arg2[%c0_1, %c0_2] : memref<4x128xbf16, #tpu.memory_space<vmem>>, vector<4x128xbf16>
    %cst = arith.constant dense<0.000000e+00> : vector<16x128xf32>
    %3 = tpu.matmul %1, %2, %cst {dimension_numbers = #tpu.dot_dimension_numbers<[1], [0], [0], [1], [0, 0, 1, 1], [], []>} : vector<16x4xbf16>, vector<4x128xbf16>, vector<16x128xf32> -> vector<16x128xf32>
    %c0_3 = arith.constant 0 : index
    %c0_4 = arith.constant 0 : index
    %4 = vector.load %arg3[%c0_3, %c0_4] : memref<1x128xf32, #tpu.memory_space<vmem>>, vector<1x128xf32>
    %5 = vector.broadcast %4 : vector<1x128xf32> to vector<16x128xf32>
    %6 = arith.addf %3, %5 : vector<16x128xf32>
    %cst_5 = arith.constant 0.000000e+00 : f32
    %7 = vector.broadcast %cst_5 : f32 to vector<16x128xf32>
    %8 = arith.maximumf %6, %7 : vector<16x128xf32>
    %9 = arith.truncf %8 : vector<16x128xf32> to vector<16x128xbf16>
    %c0_6 = arith.constant 0 : index
    %c0_7 = arith.constant 0 : index
    %10 = vector.load %arg4[%c0_6, %c0_7] : memref<128x128xbf16, #tpu.memory_space<vmem>>, vector<128x128xbf16>
    %cst_8 = arith.constant dense<0.000000e+00> : vector<16x128xf32>
    %11 = tpu.matmul %9, %10, %cst_8 {dimension_numbers = #tpu.dot_dimension_numbers<[1], [0], [0], [1], [0, 0, 1, 1], [], []>} : vector<16x128xbf16>, vector<128x128xbf16>, vector<16x128xf32> -> vector<16x128xf32>
    %c0_9 = arith.constant 0 : index
    %c0_10 = arith.constant 0 : index
    %12 = vector.load %arg5[%c0_9, %c0_10] : memref<1x128xf32, #tpu.memory_space<vmem>>, vector<1x128xf32>
    %13 = vector.broadcast %12 : vector<1x128xf32> to vector<16x128xf32>
    %14 = arith.addf %11, %13 : vector<16x128xf32>
    %cst_11 = arith.constant 0.000000e+00 : f32
    %15 = vector.broadcast %cst_11 : f32 to vector<16x128xf32>
    %16 = arith.maximumf %14, %15 : vector<16x128xf32>
    %17 = arith.truncf %16 : vector<16x128xf32> to vector<16x128xbf16>
    %c0_12 = arith.constant 0 : index
    %c0_13 = arith.constant 0 : index
    %18 = vector.load %arg6[%c0_12, %c0_13] : memref<128x128xbf16, #tpu.memory_space<vmem>>, vector<128x128xbf16>
    %cst_14 = arith.constant dense<0.000000e+00> : vector<16x128xf32>
    %19 = tpu.matmul %17, %18, %cst_14 {dimension_numbers = #tpu.dot_dimension_numbers<[1], [0], [0], [1], [0, 0, 1, 1], [], []>} : vector<16x128xbf16>, vector<128x128xbf16>, vector<16x128xf32> -> vector<16x128xf32>
    %c0_15 = arith.constant 0 : index
    %c0_16 = arith.constant 0 : index
    %20 = vector.load %arg7[%c0_15, %c0_16] : memref<1x128xf32, #tpu.memory_space<vmem>>, vector<1x128xf32>
    %21 = vector.broadcast %20 : vector<1x128xf32> to vector<16x128xf32>
    %22 = arith.addf %19, %21 : vector<16x128xf32>
    %cst_17 = arith.constant 0.000000e+00 : f32
    %23 = vector.broadcast %cst_17 : f32 to vector<16x128xf32>
    %24 = arith.maximumf %22, %23 : vector<16x128xf32>
    %25 = arith.truncf %24 : vector<16x128xf32> to vector<16x128xbf16>
    %c0_18 = arith.constant 0 : index
    %c0_19 = arith.constant 0 : index
    %26 = vector.load %arg8[%c0_18, %c0_19] : memref<128x128xbf16, #tpu.memory_space<vmem>>, vector<128x128xbf16>
    %cst_20 = arith.constant dense<0.000000e+00> : vector<16x128xf32>
    %27 = tpu.matmul %25, %26, %cst_20 {dimension_numbers = #tpu.dot_dimension_numbers<[1], [0], [0], [1], [0, 0, 1, 1], [], []>} : vector<16x128xbf16>, vector<128x128xbf16>, vector<16x128xf32> -> vector<16x128xf32>
    %c0_21 = arith.constant 0 : index
    %c0_22 = arith.constant 0 : index
    %28 = vector.load %arg9[%c0_21, %c0_22] : memref<1x128xf32, #tpu.memory_space<vmem>>, vector<1x128xf32>
    %29 = vector.broadcast %28 : vector<1x128xf32> to vector<16x128xf32>
    %30 = arith.addf %27, %29 : vector<16x128xf32>
    %cst_23 = arith.constant 0.000000e+00 : f32
    %31 = vector.broadcast %cst_23 : f32 to vector<16x128xf32>
    %32 = arith.maximumf %30, %31 : vector<16x128xf32>
    %33 = arith.truncf %32 : vector<16x128xf32> to vector<16x128xbf16>
    %c0_24 = arith.constant 0 : index
    %c0_25 = arith.constant 0 : index
    %34 = vector.load %arg10[%c0_24, %c0_25] : memref<128x128xbf16, #tpu.memory_space<vmem>>, vector<128x128xbf16>
    %cst_26 = arith.constant dense<0.000000e+00> : vector<16x128xf32>
    %35 = tpu.matmul %33, %34, %cst_26 {dimension_numbers = #tpu.dot_dimension_numbers<[1], [0], [0], [1], [0, 0, 1, 1], [], []>} : vector<16x128xbf16>, vector<128x128xbf16>, vector<16x128xf32> -> vector<16x128xf32>
    %c0_27 = arith.constant 0 : index
    %c0_28 = arith.constant 0 : index
    %36 = vector.load %arg11[%c0_27, %c0_28] : memref<1x128xf32, #tpu.memory_space<vmem>>, vector<1x128xf32>
    %37 = vector.broadcast %36 : vector<1x128xf32> to vector<16x128xf32>
    %38 = arith.addf %35, %37 : vector<16x128xf32>
    %39 = math.tanh %38 : vector<16x128xf32>
    %cst_29 = arith.constant 2.000000e+00 : f32
    %40 = vector.broadcast %cst_29 : f32 to vector<16x128xf32>
    %41 = arith.mulf %39, %40 : vector<16x128xf32>
    %42 = arith.truncf %41 : vector<16x128xf32> to vector<16x128xbf16>
    %c0_30 = arith.constant 0 : index
    %c0_31 = arith.constant 0 : index
    %43 = vector.load %arg12[%c0_30, %c0_31] : memref<16x128xbf16, #tpu.memory_space<vmem>>, vector<16x128xbf16>
    tpu.vector_store %arg12[%c0_30, %c0_31], %42 {strides = array<i32>} : memref<16x128xbf16, #tpu.memory_space<vmem>>, vector<16x128xbf16>,
    return
  }
  func.func @transform_0(%arg0: i32) -> (i32, i32) {
    %c0_i32 = arith.constant 0 : i32
    %c0_i32_0 = arith.constant 0 : i32
    return %arg0, %c0_i32 : i32, i32
  }
  func.func @transform_1(%arg0: i32) -> (i32, i32) {
    %c0_i32 = arith.constant 0 : i32
    %c0_i32_0 = arith.constant 0 : i32
    %c0_i32_1 = arith.constant 0 : i32
    return %c0_i32, %c0_i32_0 : i32, i32
  }
  func.func @transform_2(%arg0: i32) -> (i32, i32) {
    %c0_i32 = arith.constant 0 : i32
    %c0_i32_0 = arith.constant 0 : i32
    %c0_i32_1 = arith.constant 0 : i32
    return %c0_i32, %c0_i32_0 : i32, i32
  }
  func.func @transform_3(%arg0: i32) -> (i32, i32) {
    %c0_i32 = arith.constant 0 : i32
    %c0_i32_0 = arith.constant 0 : i32
    %c0_i32_1 = arith.constant 0 : i32
    return %c0_i32, %c0_i32_0 : i32, i32
  }
  func.func @transform_4(%arg0: i32) -> (i32, i32) {
    %c0_i32 = arith.constant 0 : i32
    %c0_i32_0 = arith.constant 0 : i32
    %c0_i32_1 = arith.constant 0 : i32
    return %c0_i32, %c0_i32_0 : i32, i32
  }
  func.func @transform_5(%arg0: i32) -> (i32, i32) {
    %c0_i32 = arith.constant 0 : i32
    %c0_i32_0 = arith.constant 0 : i32
    %c0_i32_1 = arith.constant 0 : i32
    return %c0_i32, %c0_i32_0 : i32, i32
  }
  func.func @transform_6(%arg0: i32) -> (i32, i32) {
    %c0_i32 = arith.constant 0 : i32
    %c0_i32_0 = arith.constant 0 : i32
    %c0_i32_1 = arith.constant 0 : i32
    return %c0_i32, %c0_i32_0 : i32, i32
  }
  func.func @transform_7(%arg0: i32) -> (i32, i32) {
    %c0_i32 = arith.constant 0 : i32
    %c0_i32_0 = arith.constant 0 : i32
    %c0_i32_1 = arith.constant 0 : i32
    return %c0_i32, %c0_i32_0 : i32, i32
  }
  func.func @transform_8(%arg0: i32) -> (i32, i32) {
    %c0_i32 = arith.constant 0 : i32
    %c0_i32_0 = arith.constant 0 : i32
    %c0_i32_1 = arith.constant 0 : i32
    return %c0_i32, %c0_i32_0 : i32, i32
  }
  func.func @transform_9(%arg0: i32) -> (i32, i32) {
    %c0_i32 = arith.constant 0 : i32
    %c0_i32_0 = arith.constant 0 : i32
    %c0_i32_1 = arith.constant 0 : i32
    return %c0_i32, %c0_i32_0 : i32, i32
  }
  func.func @transform_10(%arg0: i32) -> (i32, i32) {
    %c0_i32 = arith.constant 0 : i32
    %c0_i32_0 = arith.constant 0 : i32
    %c0_i32_1 = arith.constant 0 : i32
    return %c0_i32, %c0_i32_0 : i32, i32
  }
  func.func @transform_11(%arg0: i32) -> (i32, i32) {
    %c0_i32 = arith.constant 0 : i32
    %c0_i32_0 = arith.constant 0 : i32
    return %arg0, %c0_i32 : i32, i32
  }
}

</mosaic_0001>

<bundles_post_ra>
// kernel: tpu_custom_call.1
= control target key start
LH: loop header
LB: loop body
LE: loop exit
PB: predicated region body
PF: predicated region fallthrough
CT: control target
= control target key end

     0   :  { %16 = vsyncpa [#allocation3], 0  ;;  %s1207_s0 = inlined_call_operand.vmem [shape: f32[16,4], index: 0, kind: input, shape index: {}]   ;;  %s1208_s1 = inlined_call_operand.vmem [shape: bf16[4,128], index: 1, kind: input, shape index: {}]   ;;  %s1209_s2 = inlined_call_operand.vmem [shape: f32[1,128], index: 2, kind: input, shape index: {}]   ;;  %s1210_s3 = inlined_call_operand.hbm [shape: bf16[128,128], index: 3, kind: input, shape index: {}]   ;;  %s1211_s4 = inlined_call_operand.vmem [shape: f32[1,128], index: 4, kind: input, shape index: {}]   ;;  %s1212_s5 = inlined_call_operand.hbm [shape: bf16[128,128], index: 5, kind: input, shape index: {}]   ;;  %s1213_s6 = inlined_call_operand.vmem [shape: f32[1,128], index: 6, kind: input, shape index: {}]   ;;  %s1214_s7 = inlined_call_operand.hbm [shape: bf16[128,128], index: 7, kind: input, shape index: {}]   ;;  %s1215_s8 = inlined_call_operand.vmem [shape: f32[1,128], index: 8, kind: input, shape index: {}]   ;;  %s1216_s9 = inlined_call_operand.hbm [shape: bf16[128,128], index: 9, kind: input, shape index: {}]   ;;  %s1217_s10 = inlined_call_operand.vmem [shape: f32[1,128], index: 10, kind: input, shape index: {}]   ;;  %s1218_s11 = inlined_call_operand.hbm [shape: bf16[16,128], index: 11, kind: output, shape index: {}]  }
   0x1   :  { %17 = vsyncpa [#allocation6], 0 }
   0x2   :  { %18 = vsyncpa [#allocation9], 0 }
   0x3   :  { %19 = vsyncpa [#allocation4], 0  ;;  %s982_s17 = smov [#allocation5]   ;;  %s983_s19 = smov [#allocation2]  }
   0x4   :  { %s45_s18 = sshll.u32 %s982_s17, 4  ;;  %s31_s20 = sshll.u32 %s983_s19, 4  ;;  %s46_s18 = int_to_ptr.vmem [resolvable:$true] %s45_s18  ;;  %s1051_s20 = int_to_ptr.vmem [resolvable:$true] %s31_s20 }
   0x5   :  { %s864_s23 = scalar_lea.hbm %s1212_s5, 1024 }
   0x6   :  { %p865_p0 = scmp.ne.s32.totalorder %s1212_s5, %s864_s23  ;;  %p868_p1 = scmp.lt.u32.totalorder %s864_s23, %s1212_s5 }
   0x8   :  { %p870_p2 = pnand %p868_p1, %p865_p0 }
   0xa   :  { %873 = shalt.err (!%p870_p2)
}
   0xb   :  { %s874_s28 = scalar_lea.vmem %s46_s18, 1024  ;;  %p879_p4 = scmp.lt.s32.totalorder %s46_s18, %s46_s18 }
   0xc   :  { %p875_p3 = scmp.ne.s32.totalorder %s46_s18, %s874_s28  ;;  %p880_p5 = scmp.lt.s32.totalorder %s874_s28, %s874_s28 }
   0xe   :  { %p881_p6 = por %p880_p5, %p879_p4 }
  0x10   :  { %p882_p7 = pnand %p881_p6, %p875_p3 }
  0x12   :  { %885 = shalt.err (!%p882_p7)
}
  0x13   :  { %s984_s29 = smov 64   ;;  %s985_s30 = smov 4  }
  0x14   :  { %51 = dma.hbm_to_vmem [thread:$0]  %s1212_s5, 1024, %s46_s18, [#allocation6], %s984_s29, %s984_s29, %s985_s30  }
  0x15   :  { %s886_s16 = scalar_lea.hbm %s1210_s3, 1024 }
  0x16   :  { %p887_p8 = scmp.ne.s32.totalorder %s1210_s3, %s886_s16  ;;  %p890_p9 = scmp.lt.u32.totalorder %s886_s16, %s1210_s3 }
  0x18   :  { %p892_p10 = pnand %p890_p9, %p887_p8 }
  0x1a   :  { %895 = shalt.err (!%p892_p10)
}
  0x1b   :  { %s896_s23 = scalar_lea.vmem %s1051_s20, 1024  ;;  %p901_p12 = scmp.lt.s32.totalorder %s1051_s20, %s1051_s20 }
  0x1c   :  { %p897_p11 = scmp.ne.s32.totalorder %s1051_s20, %s896_s23  ;;  %p902_p13 = scmp.lt.s32.totalorder %s896_s23, %s896_s23 }
  0x1e   :  { %p903_p0 = por %p902_p13, %p901_p12 }
  0x20   :  { %p904_p1 = pnand %p903_p0, %p897_p11 }
  0x22   :  { %907 = shalt.err (!%p904_p1)
}
  0x23   :  { %37 = dma.hbm_to_vmem [thread:$0]  %s1210_s3, 1024, %s1051_s20, [#allocation3], %s984_s29, %s984_s29, %s985_s30  }
  0x24   :  { %s986_s24 = smov [#allocation7]   ;;  %s987_s26 = smov [#allocation8]  }
  0x25   :  { %s59_s25 = sshll.u32 %s986_s24, 4  ;;  %s73_s27 = sshll.u32 %s987_s26, 4  ;;  %s60_s25 = int_to_ptr.vmem [resolvable:$true] %s59_s25  ;;  %s1088_s27 = int_to_ptr.vmem [resolvable:$true] %s73_s27 }
  0x26   :  { %s908_s13 = scalar_lea.hbm %s1214_s7, 1024 }
  0x27   :  { %p909_p2 = scmp.ne.s32.totalorder %s1214_s7, %s908_s13  ;;  %p912_p3 = scmp.lt.u32.totalorder %s908_s13, %s1214_s7 }
  0x29   :  { %p914_p4 = pnand %p912_p3, %p909_p2 }
  0x2b   :  { %917 = shalt.err (!%p914_p4)
}
  0x2c   :  { %s918_s3 = scalar_lea.vmem %s60_s25, 1024  ;;  %p923_p6 = scmp.lt.s32.totalorder %s60_s25, %s60_s25 }
  0x2d   :  { %p919_p5 = scmp.ne.s32.totalorder %s60_s25, %s918_s3  ;;  %p924_p7 = scmp.lt.s32.totalorder %s918_s3, %s918_s3 }
  0x2f   :  { %p925_p8 = por %p924_p7, %p923_p6 }
  0x31   :  { %p926_p9 = pnand %p925_p8, %p919_p5 }
  0x33   :  { %929 = shalt.err (!%p926_p9)
}
  0x34   :  { %65 = dma.hbm_to_vmem [thread:$0]  %s1214_s7, 1024, %s60_s25, [#allocation6], %s984_s29, %s984_s29, %s985_s30  }
  0x35   :  { %s930_s23 = scalar_lea.hbm %s1216_s9, 1024 }
  0x36   :  { %p931_p10 = scmp.ne.s32.totalorder %s1216_s9, %s930_s23  ;;  %p934_p11 = scmp.lt.u32.totalorder %s930_s23, %s1216_s9 }
  0x38   :  { %p936_p12 = pnand %p934_p11, %p931_p10 }
  0x3a   :  { %939 = shalt.err (!%p936_p12)
}
  0x3b   :  { %s940_s28 = scalar_lea.vmem %s1088_s27, 1024  ;;  %p945_p0 = scmp.lt.s32.totalorder %s1088_s27, %s1088_s27 }
  0x3c   :  { %p941_p13 = scmp.ne.s32.totalorder %s1088_s27, %s940_s28  ;;  %p946_p1 = scmp.lt.s32.totalorder %s940_s28, %s940_s28 }
  0x3e   :  { %p947_p2 = por %p946_p1, %p945_p0 }
  0x40   :  { %p948_p3 = pnand %p947_p2, %p941_p13 }
  0x42   :  { %951 = shalt.err (!%p948_p3)
}
  0x43   :  { %79 = dma.hbm_to_vmem [thread:$0]  %s1216_s9, 1024, %s1088_s27, [#allocation9], %s984_s29, %s984_s29, %s985_s30  }
  0x44   :  { %974 = dma.done.wait [#allocation3], 1024  }
  0x45   :  { %975 = vsyncadd [#allocation3], 4294966272 }
  0x46   :  { %976 = dma.done.wait [#allocation6], 2048  }
  0x47   :  { %977 = vsyncadd [#allocation6], 4294965248 }
  0x48   :  { %978 = dma.done.wait [#allocation9], 1024  }
  0x49   :  { %979 = vsyncadd [#allocation9], 4294966272  ;;  %v988_v0 = vmov 0.0   ;;  %vm989_vm0 = vmmov 0   ;;  %vm110_vm1 = vcmask 1041408   ;;  %v95_v2 = vld [vmem:[%s1207_s0] sm:$0xff] }
  0x4a   :  { %733 = vmatprep.subr.bf16.mxu0 %v988_v0  ;;  %735 = vmatprep.mubr.msk.bf16.mxu0 %vm989_vm0, %v988_v0  ;;  %v98_v1 = vld [vmem:[%s1208_s1] sm:$0x3]  ;;  %v96_v3 = vld [vmem:[%s1207_s0 + $0x8] sm:$0xff]  ;;  %v828_v6 = vld [vmem:[#allocation2] sm:$0xff]   ;;  %vm106_vm2 = vcmask 31744  }
  0x4b   :  { %739 = vmatprep.subr.bf16.mxu1 %v988_v0  ;;  %755 = vmatprep.mubr.msk.bf16.mxu1 %vm989_vm0, %v988_v0  ;;  %v112_v4 = vsel %vm110_vm1, %v98_v1, 0  ;;  %v97_v5 = vpack.c.bf16 %v96_v3, %v95_v2  ;;  %v829_v7 = vld [vmem:[#allocation2 + $0x8] sm:$0xff]   ;;  %v830_v8 = vld [vmem:[#allocation2 + $0x10] sm:$0xff]   ;;  %v831_v9 = vld [vmem:[#allocation2 + $0x18] sm:$0xff]  }
  0x4c   :  { %734 = vmatpush3.bf16.msra.mxu0 %v112_v4  ;;  %740 = vmatpush3.bf16.msra.mxu1 %v828_v6  ;;  %v832_v10 = vld [vmem:[#allocation2 + $0x20] sm:$0xff]   ;;  %v833_v11 = vld [vmem:[#allocation2 + $0x28] sm:$0xff]   ;;  %v834_v12 = vld [vmem:[#allocation2 + $0x30] sm:$0xff]  }
  0x4d   :  { %759 = vmatprep.subr.bf16.mxu0 %v988_v0  ;;  %741 = vmatprep.subr.bf16.mxu1 %v988_v0  ;;  %v835_v13 = vld [vmem:[#allocation2 + $0x38] sm:$0xff]   ;;  %v836_v14 = vld [vmem:[#allocation5] sm:$0xff]   ;;  %v837_v15 = vld [vmem:[#allocation5 + $0x8] sm:$0xff]  }
  0x4e   :  { %v838_v16 = vld [vmem:[#allocation5 + $0x10] sm:$0xff]   ;;  %v839_v17 = vld [vmem:[#allocation5 + $0x18] sm:$0xff]   ;;  %v840_v18 = vld [vmem:[#allocation5 + $0x20] sm:$0xff]  }
  0x4f   :  { %736 = vmatmul.mubr.msk.bf16.vlgmr.msra.gmra.mrb[0].mxu0 %vm106_vm2, %v97_v5  ;;  %v841_v19 = vld [vmem:[#allocation5 + $0x28] sm:$0xff]   ;;  %v648_v20 = vld [vmem:[%s1209_s2] ss:$0 sm:$0xff]  ;;  %v843_v31 = vld [vmem:[#allocation5 + $0x38] sm:$0xff]  }
  0x50   :  { %775 = vmatprep.mubr.msk.bf16.mxu0 %vm989_vm0, %v988_v0  ;;  %742 = vmatpush3.bf16.msra.mxu1 %v829_v7  ;;  %v842_v30 = vld [vmem:[#allocation5 + $0x30] sm:$0xff]   ;;  %v844_v32 = vld [vmem:[#allocation7] sm:$0xff]   ;;  %v845_v33 = vld [vmem:[#allocation7 + $0x8] sm:$0xff]  }
  0x51   :  { %743 = vmatprep.subr.bf16.mxu1 %v988_v0  ;;  %760 = vmatpush3.bf16.msra.mxu0 %v836_v14  ;;  %v846_v34 = vld [vmem:[#allocation7 + $0x10] sm:$0xff]   ;;  %v847_v35 = vld [vmem:[#allocation7 + $0x18] sm:$0xff]   ;;  %v848_v36 = vld [vmem:[#allocation7 + $0x20] sm:$0xff]  }
  0x52   :  { %761 = vmatprep.subr.bf16.mxu0 %v988_v0  ;;  %v849_v37 = vld [vmem:[#allocation7 + $0x28] sm:$0xff]   ;;  %v650_v38 = vld [vmem:[%s1211_s4] ss:$0 sm:$0xff]  ;;  %v851_v49 = vld [vmem:[#allocation7 + $0x38] sm:$0xff]  }
  0x53   :  { %v850_v48 = vld [vmem:[#allocation7 + $0x30] sm:$0xff]   ;;  %v852_v50 = vld [vmem:[#allocation8] sm:$0xff]   ;;  %v853_v51 = vld [vmem:[#allocation8 + $0x8] sm:$0xff]  }
  0x54   :  { %744 = vmatpush3.bf16.msra.mxu1 %v830_v8  ;;  %v854_v52 = vld [vmem:[#allocation8 + $0x10] sm:$0xff]   ;;  %v855_v53 = vld [vmem:[#allocation8 + $0x18] sm:$0xff]   ;;  %v856_v54 = vld [vmem:[#allocation8 + $0x20] sm:$0xff]  }
  0x55   :  { %745 = vmatprep.subr.bf16.mxu1 %v988_v0  ;;  %762 = vmatpush3.bf16.msra.mxu0 %v837_v15  ;;  %v857_v55 = vld [vmem:[#allocation8 + $0x28] sm:$0xff]   ;;  %v659_v56 = vld [vmem:[%s1213_s6] ss:$0 sm:$0xff]  ;;  %v859_v4 = vld [vmem:[#allocation8 + $0x38] sm:$0xff]  }
  0x56   :  { %763 = vmatprep.subr.bf16.mxu0 %v988_v0  ;;  %v858_v3 = vld [vmem:[#allocation8 + $0x30] sm:$0xff]  }
  0x57   :  { %v668_v5 = vld [vmem:[%s1215_s8] ss:$0 sm:$0xff]  ;;  %s990_s8 = smov [#allocation10]  }
  0x58   :  { %746 = vmatpush3.bf16.msra.mxu1 %v831_v9  ;;  %s634_s21 = sshll.u32 %s990_s8, 4  ;;  %s635_s21 = int_to_ptr.vmem [resolvable:$true] %s634_s21 }
  0x59   :  { %747 = vmatprep.subr.bf16.mxu1 %v988_v0  ;;  %764 = vmatpush3.bf16.msra.mxu0 %v838_v16  ;;  %s952_s22 = scalar_lea.vmem %s635_s21, 128  ;;  %p957_p5 = scmp.lt.s32.totalorder %s635_s21, %s635_s21 }
  0x5a   :  { %765 = vmatprep.subr.bf16.mxu0 %v988_v0  ;;  %p953_p4 = scmp.ne.s32.totalorder %s635_s21, %s952_s22  ;;  %p958_p6 = scmp.lt.s32.totalorder %s952_s22, %s952_s22 }
  0x5c   :  { %748 = vmatpush3.bf16.msra.mxu1 %v832_v10  ;;  %p959_p7 = por %p958_p6, %p957_p5 }
  0x5d   :  { %749 = vmatprep.subr.bf16.mxu1 %v988_v0  ;;  %766 = vmatpush3.bf16.msra.mxu0 %v839_v17 }
  0x5e   :  { %767 = vmatprep.subr.bf16.mxu0 %v988_v0  ;;  %p960_p8 = pnand %p959_p7, %p953_p4 }
  0x60   :  { %750 = vmatpush3.bf16.msra.mxu1 %v833_v11 }
  0x61   :  { %751 = vmatprep.subr.bf16.mxu1 %v988_v0  ;;  %768 = vmatpush3.bf16.msra.mxu0 %v840_v18 }
  0x62   :  { %769 = vmatprep.subr.bf16.mxu0 %v988_v0 }
  0x64   :  { %752 = vmatpush3.bf16.msra.mxu1 %v834_v12 }
  0x65   :  { %753 = vmatprep.subr.bf16.mxu1 %v988_v0  ;;  %770 = vmatpush3.bf16.msra.mxu0 %v841_v19 }
  0x66   :  { %771 = vmatprep.subr.bf16.mxu0 %v988_v0 }
  0x68   :  { %754 = vmatpush3.bf16.msra.mxu1 %v835_v13 }
  0x69   :  { %779 = vmatprep.subr.bf16.mxu1 %v988_v0  ;;  %772 = vmatpush3.bf16.msra.mxu0 %v842_v30 }
  0x6a   :  { %773 = vmatprep.subr.bf16.mxu0 %v988_v0 }
  0x6d   :  { %774 = vmatpush3.bf16.msra.mxu0 %v843_v31 }
  0x6e   :  { %799 = vmatprep.subr.bf16.mxu0 %v988_v0 }
 0x122   :  { %v148_v21 = vpop.f32.mrb[0].mxu0 }
 0x123   :  { %v149_v22 = vadd.f32 %v648_v20, %v148_v21  ;;  %v737_v23 = vpop.f32.mrb[1].mxu0 }
 0x124   :  { %v151_v24 = vpop.f32.mrb[2].mxu0 }
 0x125   :  { %v152_v25 = vadd.f32 %v648_v20, %v151_v24  ;;  %v738_v26 = vpop.f32.mrb[3].mxu0  ;;  %v155_v27 = vmax.f32 %v149_v22, 0.0 }
 0x127   :  { %v156_v28 = vmax.f32 %v152_v25, 0.0 }
 0x129   :  { %v157_v29 = vpack.c.bf16 %v156_v28, %v155_v27 }
 0x12b   :  { %756 = vmatmul.mubr.bf16.vlgmr.msra.gmra.mrb[0].mxu1 %v157_v29 }
 0x12c   :  { %795 = vmatprep.mubr.msk.bf16.mxu1 %vm989_vm0, %v988_v0  ;;  %780 = vmatpush3.bf16.msra.mxu1 %v844_v32 }
 0x12d   :  { %781 = vmatprep.subr.bf16.mxu1 %v988_v0 }
 0x130   :  { %782 = vmatpush3.bf16.msra.mxu1 %v845_v33 }
 0x131   :  { %783 = vmatprep.subr.bf16.mxu1 %v988_v0 }
 0x134   :  { %784 = vmatpush3.bf16.msra.mxu1 %v846_v34 }
 0x135   :  { %785 = vmatprep.subr.bf16.mxu1 %v988_v0 }
 0x138   :  { %786 = vmatpush3.bf16.msra.mxu1 %v847_v35 }
 0x139   :  { %787 = vmatprep.subr.bf16.mxu1 %v988_v0 }
 0x13c   :  { %788 = vmatpush3.bf16.msra.mxu1 %v848_v36 }
 0x13d   :  { %789 = vmatprep.subr.bf16.mxu1 %v988_v0 }
 0x140   :  { %790 = vmatpush3.bf16.msra.mxu1 %v849_v37 }
 0x141   :  { %791 = vmatprep.subr.bf16.mxu1 %v988_v0 }
 0x144   :  { %792 = vmatpush3.bf16.msra.mxu1 %v850_v48 }
 0x145   :  { %793 = vmatprep.subr.bf16.mxu1 %v988_v0 }
 0x148   :  { %794 = vmatpush3.bf16.msra.mxu1 %v851_v49 }
 0x1fe   :  { %v263_v39 = vpop.f32.mrb[0].mxu1 }
 0x1ff   :  { %v264_v40 = vadd.f32 %v650_v38, %v263_v39  ;;  %v757_v41 = vpop.f32.mrb[1].mxu1 }
 0x200   :  { %v266_v42 = vpop.f32.mrb[2].mxu1 }
 0x201   :  { %v267_v43 = vadd.f32 %v650_v38, %v266_v42  ;;  %v758_v44 = vpop.f32.mrb[3].mxu1  ;;  %v270_v45 = vmax.f32 %v264_v40, 0.0 }
 0x203   :  { %v271_v46 = vmax.f32 %v267_v43, 0.0 }
 0x205   :  { %v272_v47 = vpack.c.bf16 %v271_v46, %v270_v45 }
 0x207   :  { %776 = vmatmul.mubr.bf16.vlgmr.msra.gmra.mrb[4].mxu0 %v272_v47 }
 0x208   :  { %815 = vmatprep.mubr.msk.bf16.mxu0 %vm989_vm0, %v988_v0  ;;  %800 = vmatpush3.bf16.msra.mxu0 %v852_v50 }
 0x209   :  { %801 = vmatprep.subr.bf16.mxu0 %v988_v0 }
 0x20c   :  { %802 = vmatpush3.bf16.msra.mxu0 %v853_v51 }
 0x20d   :  { %803 = vmatprep.subr.bf16.mxu0 %v988_v0 }
 0x210   :  { %804 = vmatpush3.bf16.msra.mxu0 %v854_v52 }
 0x211   :  { %805 = vmatprep.subr.bf16.mxu0 %v988_v0 }
 0x214   :  { %806 = vmatpush3.bf16.msra.mxu0 %v855_v53 }
 0x215   :  { %807 = vmatprep.subr.bf16.mxu0 %v988_v0 }
 0x218   :  { %808 = vmatpush3.bf16.msra.mxu0 %v856_v54 }
 0x219   :  { %809 = vmatprep.subr.bf16.mxu0 %v988_v0 }
 0x21c   :  { %810 = vmatpush3.bf16.msra.mxu0 %v857_v55 }
 0x21d   :  { %811 = vmatprep.subr.bf16.mxu0 %v988_v0 }
 0x220   :  { %812 = vmatpush3.bf16.msra.mxu0 %v858_v3 }
 0x221   :  { %813 = vmatprep.subr.bf16.mxu0 %v988_v0  ;;  %v677_v0 = vld [vmem:[%s1217_s10] ss:$0 sm:$0xff] }
 0x224   :  { %814 = vmatpush3.bf16.msra.mxu0 %v859_v4 }
 0x2da   :  { %v378_v57 = vpop.f32.mrb[4].mxu0 }
 0x2db   :  { %v379_v58 = vadd.f32 %v659_v56, %v378_v57  ;;  %v777_v59 = vpop.f32.mrb[5].mxu0 }
 0x2dc   :  { %v381_v60 = vpop.f32.mrb[6].mxu0 }
 0x2dd   :  { %v382_v61 = vadd.f32 %v659_v56, %v381_v60  ;;  %v778_v62 = vpop.f32.mrb[7].mxu0  ;;  %v385_v63 = vmax.f32 %v379_v58, 0.0 }
 0x2df   :  { %v386_v1 = vmax.f32 %v382_v61, 0.0 }
 0x2e1   :  { %v387_v2 = vpack.c.bf16 %v386_v1, %v385_v63 }
 0x2e3   :  { %796 = vmatmul.mubr.bf16.vlgmr.msra.gmra.mrb[4].mxu1 %v387_v2 }
 0x3b6   :  { %v493_v6 = vpop.f32.mrb[4].mxu1 }
 0x3b7   :  { %v494_v7 = vadd.f32 %v668_v5, %v493_v6  ;;  %v797_v8 = vpop.f32.mrb[5].mxu1 }
 0x3b8   :  { %v496_v9 = vpop.f32.mrb[6].mxu1 }
 0x3b9   :  { %v497_v10 = vadd.f32 %v668_v5, %v496_v9  ;;  %v798_v11 = vpop.f32.mrb[7].mxu1  ;;  %v500_v12 = vmax.f32 %v494_v7, 0.0 }
 0x3bb   :  { %v501_v13 = vmax.f32 %v497_v10, 0.0 }
 0x3bd   :  { %v502_v14 = vpack.c.bf16 %v501_v13, %v500_v12 }
 0x3bf   :  { %816 = vmatmul.mubr.bf16.vlgmr.msra.gmra.mrb[8].mxu0 %v502_v14 }
 0x492   :  { %v608_v15 = vpop.f32.mrb[8].mxu0 }
 0x493   :  { %v609_v16 = vadd.f32 %v677_v0, %v608_v15  ;;  %v817_v17 = vpop.f32.mrb[9].mxu0 }
 0x494   :  { %v611_v18 = vpop.f32.mrb[10].mxu0 }
 0x495   :  { %860 = vtanh.f32 %v609_v16  ;;  %v612_v19 = vadd.f32 %v677_v0, %v611_v18  ;;  %v818_v20 = vpop.f32.mrb[11].mxu0 }
 0x497   :  { %862 = vtanh.f32 %v612_v19 }
 0x49f   :  { %v861_v21 = vpop.eup %860 }
 0x4a0   :  { %v617_v23 = vmul.f32 2.0, %v861_v21 }
 0x4a1   :  { %v863_v22 = vpop.eup %862 }
 0x4a2   :  { %v618_v24 = vmul.f32 2.0, %v863_v22 }
 0x4a4   :  { %v693_v25 = vpack.c.bf16 %v618_v24, %v617_v23 }
 0x4a6   :  { %694 = vst [vmem:[#allocation10] sm:$0xff] %v693_v25  }
 0x4a7   :  { %963 = shalt.err (!%p960_p8)
}
 0x4a8   :  { %s964_s5 = scalar_lea.hbm %s1218_s11, 128 }
 0x4a9   :  { %p965_p9 = scmp.ne.s32.totalorder %s1218_s11, %s964_s5  ;;  %p968_p10 = scmp.lt.u32.totalorder %s964_s5, %s1218_s11 }
 0x4ab   :  { %p970_p11 = pnand %p968_p10, %p965_p9 }
 0x4ad   :  { %973 = shalt.err (!%p970_p11)
}
 0x4ae   :  { %640 = dma.vmem_to_hbm [thread:$0]  %s635_s21, 128, %s1218_s11, [#allocation4], %s984_s29, %s984_s29, %s985_s30  }
 0x4af   :  { %980 = dma.done.wait [#allocation4], 128  }
 0x4b0   :  { %981 = vsyncadd [#allocation4], 4294967168 }
 0x4b1   :  { %644 = vsyncpa [#allocation3], 1 }
 0x4b2   :  { %645 = vsyncpa [#allocation6], 1 }
 0x4b3   :  { %646 = vsyncpa [#allocation9], 1 }
 0x4b4   :  { %647 = vsyncpa [#allocation4], 1 }

// kernel: tpu_custom_call.1
= control target key start
LH: loop header
LB: loop body
LE: loop exit
PB: predicated region body
PF: predicated region fallthrough
CT: control target
= control target key end

     0   :  { %16 = vsyncpa [#allocation3], 0  ;;  %s1207_s0 = inlined_call_operand.vmem [shape: f32[16,4], index: 0, kind: input, shape index: {}]   ;;  %s1208_s1 = inlined_call_operand.vmem [shape: bf16[4,128], index: 1, kind: input, shape index: {}]   ;;  %s1209_s2 = inlined_call_operand.vmem [shape: f32[1,128], index: 2, kind: input, shape index: {}]   ;;  %s1210_s3 = inlined_call_operand.hbm [shape: bf16[128,128], index: 3, kind: input, shape index: {}]   ;;  %s1211_s4 = inlined_call_operand.vmem [shape: f32[1,128], index: 4, kind: input, shape index: {}]   ;;  %s1212_s5 = inlined_call_operand.hbm [shape: bf16[128,128], index: 5, kind: input, shape index: {}]   ;;  %s1213_s6 = inlined_call_operand.vmem [shape: f32[1,128], index: 6, kind: input, shape index: {}]   ;;  %s1214_s7 = inlined_call_operand.hbm [shape: bf16[128,128], index: 7, kind: input, shape index: {}]   ;;  %s1215_s8 = inlined_call_operand.vmem [shape: f32[1,128], index: 8, kind: input, shape index: {}]   ;;  %s1216_s9 = inlined_call_operand.hbm [shape: bf16[128,128], index: 9, kind: input, shape index: {}]   ;;  %s1217_s10 = inlined_call_operand.vmem [shape: f32[1,128], index: 10, kind: input, shape index: {}]   ;;  %s1218_s11 = inlined_call_operand.hbm [shape: bf16[16,128], index: 11, kind: output, shape index: {}]  }
   0x1   :  { %17 = vsyncpa [#allocation6], 0 }
   0x2   :  { %18 = vsyncpa [#allocation9], 0 }
   0x3   :  { %19 = vsyncpa [#allocation4], 0  ;;  %s982_s17 = smov [#allocation5]   ;;  %s983_s19 = smov [#allocation2]  }
   0x4   :  { %s45_s18 = sshll.u32 %s982_s17, 4  ;;  %s31_s20 = sshll.u32 %s983_s19, 4  ;;  %s46_s18 = int_to_ptr.vmem [resolvable:$true] %s45_s18  ;;  %s1051_s20 = int_to_ptr.vmem [resolvable:$true] %s31_s20 }
   0x5   :  { %s864_s23 = scalar_lea.hbm %s1212_s5, 1024 }
   0x6   :  { %p865_p0 = scmp.ne.s32.totalorder %s1212_s5, %s864_s23  ;;  %p868_p1 = scmp.lt.u32.totalorder %s864_s23, %s1212_s5 }
   0x8   :  { %p870_p2 = pnand %p868_p1, %p865_p0 }
   0xa   :  { %873 = shalt.err (!%p870_p2)
}
   0xb   :  { %s874_s28 = scalar_lea.vmem %s46_s18, 1024  ;;  %p879_p4 = scmp.lt.s32.totalorder %s46_s18, %s46_s18 }
   0xc   :  { %p875_p3 = scmp.ne.s32.totalorder %s46_s18, %s874_s28  ;;  %p880_p5 = scmp.lt.s32.totalorder %s874_s28, %s874_s28 }
   0xe   :  { %p881_p6 = por %p880_p5, %p879_p4 }
  0x10   :  { %p882_p7 = pnand %p881_p6, %p875_p3 }
  0x12   :  { %885 = shalt.err (!%p882_p7)
}
  0x13   :  { %s984_s29 = smov 64   ;;  %s985_s30 = smov 4  }
  0x14   :  { %51 = dma.hbm_to_vmem [thread:$0]  %s1212_s5, 1024, %s46_s18, [#allocation6], %s984_s29, %s984_s29, %s985_s30  }
  0x15   :  { %s886_s16 = scalar_lea.hbm %s1210_s3, 1024 }
  0x16   :  { %p887_p8 = scmp.ne.s32.totalorder %s1210_s3, %s886_s16  ;;  %p890_p9 = scmp.lt.u32.totalorder %s886_s16, %s1210_s3 }
  0x18   :  { %p892_p10 = pnand %p890_p9, %p887_p8 }
  0x1a   :  { %895 = shalt.err (!%p892_p10)
}
  0x1b   :  { %s896_s23 = scalar_lea.vmem %s1051_s20, 1024  ;;  %p901_p12 = scmp.lt.s32.totalorder %s1051_s20, %s1051_s20 }
  0x1c   :  { %p897_p11 = scmp.ne.s32.totalorder %s1051_s20, %s896_s23  ;;  %p902_p13 = scmp.lt.s32.totalorder %s896_s23, %s896_s23 }
  0x1e   :  { %p903_p0 = por %p902_p13, %p901_p12 }
  0x20   :  { %p904_p1 = pnand %p903_p0, %p897_p11 }
  0x22   :  { %907 = shalt.err (!%p904_p1)
}
  0x23   :  { %37 = dma.hbm_to_vmem [thread:$0]  %s1210_s3, 1024, %s1051_s20, [#allocation3], %s984_s29, %s984_s29, %s985_s30  }
  0x24   :  { %s986_s24 = smov [#allocation7]   ;;  %s987_s26 = smov [#allocation8]  }
  0x25   :  { %s59_s25 = sshll.u32 %s986_s24, 4  ;;  %s73_s27 = sshll.u32 %s987_s26, 4  ;;  %s60_s25 = int_to_ptr.vmem [resolvable:$true] %s59_s25  ;;  %s1088_s27 = int_to_ptr.vmem [resolvable:$true] %s73_s27 }
  0x26   :  { %s908_s13 = scalar_lea.hbm %s1214_s7, 1024 }
  0x27   :  { %p909_p2 = scmp.ne.s32.totalorder %s1214_s7, %s908_s13  ;;  %p912_p3 = scmp.lt.u32.totalorder %s908_s13, %s1214_s7 }
  0x29   :  { %p914_p4 = pnand %p912_p3, %p909_p2 }
  0x2b   :  { %917 = shalt.err (!%p914_p4)
}
  0x2c   :  { %s918_s3 = scalar_lea.vmem %s60_s25, 1024  ;;  %p923_p6 = scmp.lt.s32.totalorder %s60_s25, %s60_s25 }
  0x2d   :  { %p919_p5 = scmp.ne.s32.totalorder %s60_s25, %s918_s3  ;;  %p924_p7 = scmp.lt.s32.totalorder %s918_s3, %s918_s3 }
  0x2f   :  { %p925_p8 = por %p924_p7, %p923_p6 }
  0x31   :  { %p926_p9 = pnand %p925_p8, %p919_p5 }
  0x33   :  { %929 = shalt.err (!%p926_p9)
}
  0x34   :  { %65 = dma.hbm_to_vmem [thread:$0]  %s1214_s7, 1024, %s60_s25, [#allocation6], %s984_s29, %s984_s29, %s985_s30  }
  0x35   :  { %s930_s23 = scalar_lea.hbm %s1216_s9, 1024 }
  0x36   :  { %p931_p10 = scmp.ne.s32.totalorder %s1216_s9, %s930_s23  ;;  %p934_p11 = scmp.lt.u32.totalorder %s930_s23, %s1216_s9 }
  0x38   :  { %p936_p12 = pnand %p934_p11, %p931_p10 }
  0x3a   :  { %939 = shalt.err (!%p936_p12)
}
  0x3b   :  { %s940_s28 = scalar_lea.vmem %s1088_s27, 1024  ;;  %p945_p0 = scmp.lt.s32.totalorder %s1088_s27, %s1088_s27 }
  0x3c   :  { %p941_p13 = scmp.ne.s32.totalorder %s1088_s27, %s940_s28  ;;  %p946_p1 = scmp.lt.s32.totalorder %s940_s28, %s940_s28 }
  0x3e   :  { %p947_p2 = por %p946_p1, %p945_p0 }
  0x40   :  { %p948_p3 = pnand %p947_p2, %p941_p13 }
  0x42   :  { %951 = shalt.err (!%p948_p3)
}
  0x43   :  { %79 = dma.hbm_to_vmem [thread:$0]  %s1216_s9, 1024, %s1088_s27, [#allocation9], %s984_s29, %s984_s29, %s985_s30  }
  0x44   :  { %974 = dma.done.wait [#allocation3], 1024  }
  0x45   :  { %975 = vsyncadd [#allocation3], 4294966272 }
  0x46   :  { %976 = dma.done.wait [#allocation6], 2048  }
  0x47   :  { %977 = vsyncadd [#allocation6], 4294965248 }
  0x48   :  { %978 = dma.done.wait [#allocation9], 1024  }
  0x49   :  { %979 = vsyncadd [#allocation9], 4294966272  ;;  %v988_v0 = vmov 0.0   ;;  %vm989_vm0 = vmmov 0   ;;  %vm110_vm1 = vcmask 1041408   ;;  %v95_v2 = vld [vmem:[%s1207_s0] sm:$0xff] }
  0x4a   :  { %733 = vmatprep.subr.bf16.mxu0 %v988_v0  ;;  %735 = vmatprep.mubr.msk.bf16.mxu0 %vm989_vm0, %v988_v0  ;;  %v98_v1 = vld [vmem:[%s1208_s1] sm:$0x3]  ;;  %v96_v3 = vld [vmem:[%s1207_s0 + $0x8] sm:$0xff]  ;;  %v828_v6 = vld [vmem:[#allocation2] sm:$0xff]   ;;  %vm106_vm2 = vcmask 31744  }
  0x4b   :  { %739 = vmatprep.subr.bf16.mxu1 %v988_v0  ;;  %755 = vmatprep.mubr.msk.bf16.mxu1 %vm989_vm0, %v988_v0  ;;  %v112_v4 = vsel %vm110_vm1, %v98_v1, 0  ;;  %v97_v5 = vpack.c.bf16 %v96_v3, %v95_v2  ;;  %v829_v7 = vld [vmem:[#allocation2 + $0x8] sm:$0xff]   ;;  %v830_v8 = vld [vmem:[#allocation2 + $0x10] sm:$0xff]   ;;  %v831_v9 = vld [vmem:[#allocation2 + $0x18] sm:$0xff]  }
  0x4c   :  { %734 = vmatpush3.bf16.msra.mxu0 %v112_v4  ;;  %740 = vmatpush3.bf16.msra.mxu1 %v828_v6  ;;  %v832_v10 = vld [vmem:[#allocation2 + $0x20] sm:$0xff]   ;;  %v833_v11 = vld [vmem:[#allocation2 + $0x28] sm:$0xff]   ;;  %v834_v12 = vld [vmem:[#allocation2 + $0x30] sm:$0xff]  }
  0x4d   :  { %759 = vmatprep.subr.bf16.mxu0 %v988_v0  ;;  %741 = vmatprep.subr.bf16.mxu1 %v988_v0  ;;  %v835_v13 = vld [vmem:[#allocation2 + $0x38] sm:$0xff]   ;;  %v836_v14 = vld [vmem:[#allocation5] sm:$0xff]   ;;  %v837_v15 = vld [vmem:[#allocation5 + $0x8] sm:$0xff]  }
  0x4e   :  { %v838_v16 = vld [vmem:[#allocation5 + $0x10] sm:$0xff]   ;;  %v839_v17 = vld [vmem:[#allocation5 + $0x18] sm:$0xff]   ;;  %v840_v18 = vld [vmem:[#allocation5 + $0x20] sm:$0xff]  }
  0x4f   :  { %736 = vmatmul.mubr.msk.bf16.vlgmr.msra.gmra.mrb[0].mxu0 %vm106_vm2, %v97_v5  ;;  %v841_v19 = vld [vmem:[#allocation5 + $0x28] sm:$0xff]   ;;  %v648_v20 = vld [vmem:[%s1209_s2] ss:$0 sm:$0xff]  ;;  %v843_v31 = vld [vmem:[#allocation5 + $0x38] sm:$0xff]  }
  0x50   :  { %775 = vmatprep.mubr.msk.bf16.mxu0 %vm989_vm0, %v988_v0  ;;  %742 = vmatpush3.bf16.msra.mxu1 %v829_v7  ;;  %v842_v30 = vld [vmem:[#allocation5 + $0x30] sm:$0xff]   ;;  %v844_v32 = vld [vmem:[#allocation7] sm:$0xff]   ;;  %v845_v33 = vld [vmem:[#allocation7 + $0x8] sm:$0xff]  }
  0x51   :  { %743 = vmatprep.subr.bf16.mxu1 %v988_v0  ;;  %760 = vmatpush3.bf16.msra.mxu0 %v836_v14  ;;  %v846_v34 = vld [vmem:[#allocation7 + $0x10] sm:$0xff]   ;;  %v847_v35 = vld [vmem:[#allocation7 + $0x18] sm:$0xff]   ;;  %v848_v36 = vld [vmem:[#allocation7 + $0x20] sm:$0xff]  }
  0x52   :  { %761 = vmatprep.subr.bf16.mxu0 %v988_v0  ;;  %v849_v37 = vld [vmem:[#allocation7 + $0x28] sm:$0xff]   ;;  %v650_v38 = vld [vmem:[%s1211_s4] ss:$0 sm:$0xff]  ;;  %v851_v49 = vld [vmem:[#allocation7 + $0x38] sm:$0xff]  }
  0x53   :  { %v850_v48 = vld [vmem:[#allocation7 + $0x30] sm:$0xff]   ;;  %v852_v50 = vld [vmem:[#allocation8] sm:$0xff]   ;;  %v853_v51 = vld [vmem:[#allocation8 + $0x8] sm:$0xff]  }
  0x54   :  { %744 = vmatpush3.bf16.msra.mxu1 %v830_v8  ;;  %v854_v52 = vld [vmem:[#allocation8 + $0x10] sm:$0xff]   ;;  %v855_v53 = vld [vmem:[#allocation8 + $0x18] sm:$0xff]   ;;  %v856_v54 = vld [vmem:[#allocation8 + $0x20] sm:$0xff]  }
  0x55   :  { %745 = vmatprep.subr.bf16.mxu1 %v988_v0  ;;  %762 = vmatpush3.bf16.msra.mxu0 %v837_v15  ;;  %v857_v55 = vld [vmem:[#allocation8 + $0x28] sm:$0xff]   ;;  %v659_v56 = vld [vmem:[%s1213_s6] ss:$0 sm:$0xff]  ;;  %v859_v4 = vld [vmem:[#allocation8 + $0x38] sm:$0xff]  }
  0x56   :  { %763 = vmatprep.subr.bf16.mxu0 %v988_v0  ;;  %v858_v3 = vld [vmem:[#allocation8 + $0x30] sm:$0xff]  }
  0x57   :  { %v668_v5 = vld [vmem:[%s1215_s8] ss:$0 sm:$0xff]  ;;  %s990_s8 = smov [#allocation10]  }
  0x58   :  { %746 = vmatpush3.bf16.msra.mxu1 %v831_v9  ;;  %s634_s21 = sshll.u32 %s990_s8, 4  ;;  %s635_s21 = int_to_ptr.vmem [resolvable:$true] %s634_s21 }
  0x59   :  { %747 = vmatprep.subr.bf16.mxu1 %v988_v0  ;;  %764 = vmatpush3.bf16.msra.mxu0 %v838_v16  ;;  %s952_s22 = scalar_lea.vmem %s635_s21, 128  ;;  %p957_p5 = scmp.lt.s32.totalorder %s635_s21, %s635_s21 }
  0x5a   :  { %765 = vmatprep.subr.bf16.mxu0 %v988_v0  ;;  %p953_p4 = scmp.ne.s32.totalorder %s635_s21, %s952_s22  ;;  %p958_p6 = scmp.lt.s32.totalorder %s952_s22, %s952_s22 }
  0x5c   :  { %748 = vmatpush3.bf16.msra.mxu1 %v832_v10  ;;  %p959_p7 = por %p958_p6, %p957_p5 }
  0x5d   :  { %749 = vmatprep.subr.bf16.mxu1 %v988_v0  ;;  %766 = vmatpush3.bf16.msra.mxu0 %v839_v17 }
  0x5e   :  { %767 = vmatprep.subr.bf16.mxu0 %v988_v0  ;;  %p960_p8 = pnand %p959_p7, %p953_p4 }
  0x60   :  { %750 = vmatpush3.bf16.msra.mxu1 %v833_v11 }
  0x61   :  { %751 = vmatprep.subr.bf16.mxu1 %v988_v0  ;;  %768 = vmatpush3.bf16.msra.mxu0 %v840_v18 }
  0x62   :  { %769 = vmatprep.subr.bf16.mxu0 %v988_v0 }
  0x64   :  { %752 = vmatpush3.bf16.msra.mxu1 %v834_v12 }
  0x65   :  { %753 = vmatprep.subr.bf16.mxu1 %v988_v0  ;;  %770 = vmatpush3.bf16.msra.mxu0 %v841_v19 }
  0x66   :  { %771 = vmatprep.subr.bf16.mxu0 %v988_v0 }
  0x68   :  { %754 = vmatpush3.bf16.msra.mxu1 %v835_v13 }
  0x69   :  { %779 = vmatprep.subr.bf16.mxu1 %v988_v0  ;;  %772 = vmatpush3.bf16.msra.mxu0 %v842_v30 }
  0x6a   :  { %773 = vmatprep.subr.bf16.mxu0 %v988_v0 }
  0x6d   :  { %774 = vmatpush3.bf16.msra.mxu0 %v843_v31 }
  0x6e   :  { %799 = vmatprep.subr.bf16.mxu0 %v988_v0 }
 0x122   :  { %v148_v21 = vpop.f32.mrb[0].mxu0 }
 0x123   :  { %v149_v22 = vadd.f32 %v648_v20, %v148_v21  ;;  %v737_v23 = vpop.f32.mrb[1].mxu0 }
 0x124   :  { %v151_v24 = vpop.f32.mrb[2].mxu0 }
 0x125   :  { %v152_v25 = vadd.f32 %v648_v20, %v151_v24  ;;  %v738_v26 = vpop.f32.mrb[3].mxu0  ;;  %v155_v27 = vmax.f32 %v149_v22, 0.0 }
 0x127   :  { %v156_v28 = vmax.f32 %v152_v25, 0.0 }
 0x129   :  { %v157_v29 = vpack.c.bf16 %v156_v28, %v155_v27 }
 0x12b   :  { %756 = vmatmul.mubr.bf16.vlgmr.msra.gmra.mrb[0].mxu1 %v157_v29 }
 0x12c   :  { %795 = vmatprep.mubr.msk.bf16.mxu1 %vm989_vm0, %v988_v0  ;;  %780 = vmatpush3.bf16.msra.mxu1 %v844_v32 }
 0x12d   :  { %781 = vmatprep.subr.bf16.mxu1 %v988_v0 }
 0x130   :  { %782 = vmatpush3.bf16.msra.mxu1 %v845_v33 }
 0x131   :  { %783 = vmatprep.subr.bf16.mxu1 %v988_v0 }
 0x134   :  { %784 = vmatpush3.bf16.msra.mxu1 %v846_v34 }
 0x135   :  { %785 = vmatprep.subr.bf16.mxu1 %v988_v0 }
 0x138   :  { %786 = vmatpush3.bf16.msra.mxu1 %v847_v35 }
 0x139   :  { %787 = vmatprep.subr.bf16.mxu1 %v988_v0 }
 0x13c   :  { %788 = vmatpush3.bf16.msra.mxu1 %v848_v36 }
 0x13d   :  { %789 = vmatprep.subr.bf16.mxu1 %v988_v0 }
 0x140   :  { %790 = vmatpush3.bf16.msra.mxu1 %v849_v37 }
 0x141   :  { %791 = vmatprep.subr.bf16.mxu1 %v988_v0 }
 0x144   :  { %792 = vmatpush3.bf16.msra.mxu1 %v850_v48 }
 0x145   :  { %793 = vmatprep.subr.bf16.mxu1 %v988_v0 }
 0x148   :  { %794 = vmatpush3.bf16.msra.mxu1 %v851_v49 }
 0x1fe   :  { %v263_v39 = vpop.f32.mrb[0].mxu1 }
 0x1ff   :  { %v264_v40 = vadd.f32 %v650_v38, %v263_v39  ;;  %v757_v41 = vpop.f32.mrb[1].mxu1 }
 0x200   :  { %v266_v42 = vpop.f32.mrb[2].mxu1 }
 0x201   :  { %v267_v43 = vadd.f32 %v650_v38, %v266_v42  ;;  %v758_v44 = vpop.f32.mrb[3].mxu1  ;;  %v270_v45 = vmax.f32 %v264_v40, 0.0 }
 0x203   :  { %v271_v46 = vmax.f32 %v267_v43, 0.0 }
 0x205   :  { %v272_v47 = vpack.c.bf16 %v271_v46, %v270_v45 }
 0x207   :  { %776 = vmatmul.mubr.bf16.vlgmr.msra.gmra.mrb[4].mxu0 %v272_v47 }
 0x208   :  { %815 = vmatprep.mubr.msk.bf16.mxu0 %vm989_vm0, %v988_v0  ;;  %800 = vmatpush3.bf16.msra.mxu0 %v852_v50 }
 0x209   :  { %801 = vmatprep.subr.bf16.mxu0 %v988_v0 }
 0x20c   :  { %802 = vmatpush3.bf16.msra.mxu0 %v853_v51 }
 0x20d   :  { %803 = vmatprep.subr.bf16.mxu0 %v988_v0 }
 0x210   :  { %804 = vmatpush3.bf16.msra.mxu0 %v854_v52 }
 0x211   :  { %805 = vmatprep.subr.bf16.mxu0 %v988_v0 }
 0x214   :  { %806 = vmatpush3.bf16.msra.mxu0 %v855_v53 }
 0x215   :  { %807 = vmatprep.subr.bf16.mxu0 %v988_v0 }
 0x218   :  { %808 = vmatpush3.bf16.msra.mxu0 %v856_v54 }
 0x219   :  { %809 = vmatprep.subr.bf16.mxu0 %v988_v0 }
 0x21c   :  { %810 = vmatpush3.bf16.msra.mxu0 %v857_v55 }
 0x21d   :  { %811 = vmatprep.subr.bf16.mxu0 %v988_v0 }
 0x220   :  { %812 = vmatpush3.bf16.msra.mxu0 %v858_v3 }
 0x221   :  { %813 = vmatprep.subr.bf16.mxu0 %v988_v0  ;;  %v677_v0 = vld [vmem:[%s1217_s10] ss:$0 sm:$0xff] }
 0x224   :  { %814 = vmatpush3.bf16.msra.mxu0 %v859_v4 }
 0x2da   :  { %v378_v57 = vpop.f32.mrb[4].mxu0 }
 0x2db   :  { %v379_v58 = vadd.f32 %v659_v56, %v378_v57  ;;  %v777_v59 = vpop.f32.mrb[5].mxu0 }
 0x2dc   :  { %v381_v60 = vpop.f32.mrb[6].mxu0 }
 0x2dd   :  { %v382_v61 = vadd.f32 %v659_v56, %v381_v60  ;;  %v778_v62 = vpop.f32.mrb[7].mxu0  ;;  %v385_v63 = vmax.f32 %v379_v58, 0.0 }
 0x2df   :  { %v386_v1 = vmax.f32 %v382_v61, 0.0 }
 0x2e1   :  { %v387_v2 = vpack.c.bf16 %v386_v1, %v385_v63 }
 0x2e3   :  { %796 = vmatmul.mubr.bf16.vlgmr.msra.gmra.mrb[4].mxu1 %v387_v2 }
 0x3b6   :  { %v493_v6 = vpop.f32.mrb[4].mxu1 }
 0x3b7   :  { %v494_v7 = vadd.f32 %v668_v5, %v493_v6  ;;  %v797_v8 = vpop.f32.mrb[5].mxu1 }
 0x3b8   :  { %v496_v9 = vpop.f32.mrb[6].mxu1 }
 0x3b9   :  { %v497_v10 = vadd.f32 %v668_v5, %v496_v9  ;;  %v798_v11 = vpop.f32.mrb[7].mxu1  ;;  %v500_v12 = vmax.f32 %v494_v7, 0.0 }
 0x3bb   :  { %v501_v13 = vmax.f32 %v497_v10, 0.0 }
 0x3bd   :  { %v502_v14 = vpack.c.bf16 %v501_v13, %v500_v12 }
 0x3bf   :  { %816 = vmatmul.mubr.bf16.vlgmr.msra.gmra.mrb[8].mxu0 %v502_v14 }
 0x492   :  { %v608_v15 = vpop.f32.mrb[8].mxu0 }
 0x493   :  { %v609_v16 = vadd.f32 %v677_v0, %v608_v15  ;;  %v817_v17 = vpop.f32.mrb[9].mxu0 }
 0x494   :  { %v611_v18 = vpop.f32.mrb[10].mxu0 }
 0x495   :  { %860 = vtanh.f32 %v609_v16  ;;  %v612_v19 = vadd.f32 %v677_v0, %v611_v18  ;;  %v818_v20 = vpop.f32.mrb[11].mxu0 }
 0x497   :  { %862 = vtanh.f32 %v612_v19 }
 0x49f   :  { %v861_v21 = vpop.eup %860 }
 0x4a0   :  { %v617_v23 = vmul.f32 2.0, %v861_v21 }
 0x4a1   :  { %v863_v22 = vpop.eup %862 }
 0x4a2   :  { %v618_v24 = vmul.f32 2.0, %v863_v22 }
 0x4a4   :  { %v693_v25 = vpack.c.bf16 %v618_v24, %v617_v23 }
 0x4a6   :  { %694 = vst [vmem:[#allocation10] sm:$0xff] %v693_v25  }
 0x4a7   :  { %963 = shalt.err (!%p960_p8)
}
 0x4a8   :  { %s964_s5 = scalar_lea.hbm %s1218_s11, 128 }
 0x4a9   :  { %p965_p9 = scmp.ne.s32.totalorder %s1218_s11, %s964_s5  ;;  %p968_p10 = scmp.lt.u32.totalorder %s964_s5, %s1218_s11 }
 0x4ab   :  { %p970_p11 = pnand %p968_p10, %p965_p9 }
 0x4ad   :  { %973 = shalt.err (!%p970_p11)
}
 0x4ae   :  { %640 = dma.vmem_to_hbm [thread:$0]  %s635_s21, 128, %s1218_s11, [#allocation4], %s984_s29, %s984_s29, %s985_s30  }
 0x4af   :  { %980 = dma.done.wait [#allocation4], 128  }
 0x4b0   :  { %981 = vsyncadd [#allocation4], 4294967168 }
 0x4b1   :  { %644 = vsyncpa [#allocation3], 1 }
 0x4b2   :  { %645 = vsyncpa [#allocation6], 1 }
 0x4b3   :  { %646 = vsyncpa [#allocation9], 1 }
 0x4b4   :  { %647 = vsyncpa [#allocation4], 1 }

</bundles_post_ra>
